<compile_context>
chip_gen: v7x
topology: tpu7x:2x2x1
jax: 0.10.0
libtpu: 0.0.40
codegen_flags: <defaults>
</compile_context>

<pallas_src>
import functools
import math

import jax
import jax.numpy as jnp
from jax.experimental import pallas as pl
from jax.experimental.pallas import tpu as pltpu

_LANE = 128
_SUBLANE = 8
_NEG = -1e30  # finite "-inf": exp(x - m) underflows to 0, never yields NaN


def _round_up(x, m):
    return (x + m - 1) // m * m


def _cdiv(a, b):
    return -(-a // b)


def _vmem_capacity_bytes():
    try:
        info = pltpu.get_tpu_info()
        cap = getattr(info, "vmem_capacity_bytes", None)
        if cap:
            return int(cap)
    except Exception:
        pass
    return 64 * 1024 * 1024  # conservative default (v7x per-TensorCore VMEM)


def _vmem_limit_bytes():
    cap = _vmem_capacity_bytes()
    if cap >= 100 * 1024 * 1024:           # v5e / v6e: 128 MiB physical VMEM
        return 112 * 1024 * 1024
    # v7x (64 MiB per TC) or unknown/smaller: stay well inside the cap.
    return max(16 * 1024 * 1024, min(cap - 8 * 1024 * 1024, 56 * 1024 * 1024))


def _choose_blocks(B, C, pipe_bytes_per_elem, vmem_limit):
    """Jointly pick (row_block, class_block) against the VMEM budget."""
    usable = vmem_limit - 8 * 1024 * 1024  # headroom: scratch, out bufs, misc
    # VMEM bytes per tile element: 2 pipeline buffers per input (input dtype)
    # plus ~3 full-tile f32 compute temporaries (masking / exp / products).
    per_elem = pipe_bytes_per_elem + 3 * 4
    B8 = _round_up(B, _SUBLANE)
    bc_full = _round_up(C, _LANE)

    # Let the class block grow to fill the budget while keeping at least
    # min(B, 64) rows per tile; cap it at the (padded) class count so small /
    # medium vocabularies always take the single-class-block fast path.
    bm_floor = min(B8, 64)
    bc = usable // (bm_floor * per_elem)
    bc = max(_LANE, min(bc_full, bc // _LANE * _LANE))
    bm = usable // (bc * per_elem)
    bm = max(_SUBLANE, min(B8, bm // _SUBLANE * _SUBLANE))

    # Guarantee >= 2 row blocks for moderate batches so the "parallel" row
    # axis can shard across both TensorCores on v7x (near-free on 1-TC chips).
    if B8 >= 128 and bm >= B8:
        bm = _round_up(_cdiv(B8, 2), _SUBLANE)
    return bm, bc


def _xent_kernel_single(labels_ref, logits_ref, out_ref, *, C, bc, mask_c):
    """Single class block: one-pass logsumexp, no scratch, no online rescale."""
    logits = logits_ref[...].astype(jnp.float32)
    labels = labels_ref[...].astype(jnp.float32)
    if mask_c:
        col = jax.lax.broadcasted_iota(jnp.int32, (1, bc), 1)
        valid = col < C
        logits = jnp.where(valid, logits, _NEG)
        labels = jnp.where(valid, labels, 0.0)
    m = jnp.max(logits, axis=-1, keepdims=True)
    se = jnp.sum(jnp.exp(logits - m), axis=-1, keepdims=True)
    lse = m + jnp.log(se)
    loss = (jnp.sum(labels, axis=-1, keepdims=True) * lse
            - jnp.sum(labels * logits, axis=-1, keepdims=True))
    out_ref[...] = loss.astype(out_ref.dtype)


def _xent_kernel_online(labels_ref, logits_ref, out_ref, acc_ref, *, C, bc, mask_c):
    """Multiple class blocks: online logsumexp + running weighted sums.

    acc_ref lanes: 0 = running max m, 1 = running exp-sum se,
                   2 = sum(labels),   3 = sum(labels * logits).
    """
    k = pl.program_id(1)
    nk = pl.num_programs(1)

    @pl.when(k == 0)
    def _init():
        acc_ref[...] = jnp.zeros(acc_ref.shape, jnp.float32)
        # Init m to -1e30 (not -inf) so alpha = exp(m_prev - m_new) is never NaN.
        acc_ref[:, 0:1] = jnp.full((acc_ref.shape[0], 1), _NEG, jnp.float32)

    logits = logits_ref[...].astype(jnp.float32)
    labels = labels_ref[...].astype(jnp.float32)
    if mask_c:
        col = jax.lax.broadcasted_iota(jnp.int32, (1, bc), 1) + k * bc
        valid = col < C
        logits = jnp.where(valid, logits, _NEG)
        labels = jnp.where(valid, labels, 0.0)

    m_prev = acc_ref[:, 0:1]
    se_prev = acc_ref[:, 1:2]
    m_new = jnp.maximum(m_prev, jnp.max(logits, axis=-1, keepdims=True))
    alpha = jnp.exp(m_prev - m_new)
    se_new = alpha * se_prev + jnp.sum(jnp.exp(logits - m_new), axis=-1,
                                       keepdims=True)
    acc_ref[:, 0:1] = m_new
    acc_ref[:, 1:2] = se_new
    acc_ref[:, 2:3] = acc_ref[:, 2:3] + jnp.sum(labels, axis=-1, keepdims=True)
    acc_ref[:, 3:4] = acc_ref[:, 3:4] + jnp.sum(labels * logits, axis=-1,
                                                keepdims=True)

    @pl.when(k == nk - 1)
    def _finalize():
        lse = acc_ref[:, 0:1] + jnp.log(acc_ref[:, 1:2])
        out_ref[...] = (acc_ref[:, 2:3] * lse - acc_ref[:, 3:4]).astype(out_ref.dtype)


def softmax_cross_entropy_with_logits(labels, logits, dim=-1, *, block_override=None):
    """Per-row cross entropy: (-labels * log_softmax(logits, dim)).sum(dim)."""
    assert labels.shape == logits.shape, "labels and logits must match in shape"
    nd = logits.ndim
    axis = dim % nd
    if axis != nd - 1:
        labels = jnp.moveaxis(labels, axis, -1)
        logits = jnp.moveaxis(logits, axis, -1)

    lead_shape = logits.shape[:-1]
    C = logits.shape[-1]
    B = int(math.prod(lead_shape)) if lead_shape else 1

    labels2 = labels.reshape(B, C)
    logits2 = logits.reshape(B, C)

    pipe_bytes = 2 * (labels2.dtype.itemsize + logits2.dtype.itemsize)
    vmem_limit = _vmem_limit_bytes()
    if block_override is not None:
        bm, bc = block_override
    else:
        bm, bc = _choose_blocks(B, C, pipe_bytes, vmem_limit)

    ni = _cdiv(B, bm)
    nk = _cdiv(C, bc)
    mask_c = (C % bc) != 0  # last (or only) class block overruns C

    out_shape = jax.ShapeDtypeStruct((B, 1), jnp.float32)

    if nk == 1:
        kernel = functools.partial(_xent_kernel_single, C=C, bc=bc, mask_c=mask_c)
        out = pl.pallas_call(
            kernel,
            out_shape=out_shape,
            grid_spec=pltpu.PrefetchScalarGridSpec(
                num_scalar_prefetch=0,
                grid=(ni,),
                in_specs=[
                    pl.BlockSpec((bm, bc), lambda i: (i, 0)),  # labels
                    pl.BlockSpec((bm, bc), lambda i: (i, 0)),  # logits
                ],
                out_specs=pl.BlockSpec((bm, 1), lambda i: (i, 0)),
            ),
            compiler_params=pltpu.CompilerParams(
                dimension_semantics=("parallel",),
                vmem_limit_bytes=vmem_limit,
            ),
        )(labels2, logits2)
    else:
        kernel = functools.partial(_xent_kernel_online, C=C, bc=bc, mask_c=mask_c)
        out = pl.pallas_call(
            kernel,
            out_shape=out_shape,
            grid_spec=pltpu.PrefetchScalarGridSpec(
                num_scalar_prefetch=0,
                grid=(ni, nk),
                in_specs=[
                    pl.BlockSpec((bm, bc), lambda i, k: (i, k)),  # labels
                    pl.BlockSpec((bm, bc), lambda i, k: (i, k)),  # logits
                ],
                out_specs=pl.BlockSpec((bm, 1), lambda i, k: (i, 0)),
                scratch_shapes=[pltpu.VMEM((bm, 4), jnp.float32)],
            ),
            compiler_params=pltpu.CompilerParams(
                dimension_semantics=("parallel", "arbitrary"),
                vmem_limit_bytes=vmem_limit,
            ),
        )(labels2, logits2)

    res_dtype = jnp.result_type(labels.dtype, logits.dtype)
    return out[:, 0].reshape(lead_shape).astype(res_dtype)


if __name__ == "__main__":
    key = jax.random.PRNGKey(0)
    k = jax.random.split(key, 8)

    def ref_fn(labels, logits, dim=-1):
        return jnp.sum(-labels * jax.nn.log_softmax(logits, axis=dim), axis=dim)

    def check(out, ref):
        assert out.shape == ref.shape, (out.shape, ref.shape)
        assert jnp.allclose(out, ref, atol=1e-4, rtol=1e-4), float(
            jnp.max(jnp.abs(out - ref)))

    # 1) Aligned shapes -> single class block, no masking.
    B, C = 8, 128
    logits = jax.random.normal(k[0], (B, C), dtype=jnp.float32)
    labels = jax.nn.softmax(jax.random.normal(k[1], (B, C), dtype=jnp.float32), axis=-1)
    out = jax.block_until_ready(softmax_cross_entropy_with_logits(labels, logits))
    check(out, ref_fn(labels, logits))

    # 2) Ragged rows and classes -> partial edge blocks handled by in-kernel
    #    lane masking + clipped boundary writes (no host-side jnp.pad).
    B2, C2 = 5, 96
    logits2 = jax.random.normal(k[2], (B2, C2), dtype=jnp.float32)
    labels2 = jax.nn.softmax(jax.random.normal(k[3], (B2, C2), dtype=jnp.float32), axis=-1)
    out2 = jax.block_until_ready(softmax_cross_entropy_with_logits(labels2, logits2))
    check(out2, ref_fn(labels2, logits2))

    # 3) Multi class-block online-logsumexp path, exercised at small shapes via
    #    forced small blocks; ragged rows and a ragged last class block.
    B3, C3 = 13, 400
    logits3 = jax.random.normal(k[4], (B3, C3), dtype=jnp.float32)
    labels3 = jax.nn.softmax(jax.random.normal(k[5], (B3, C3), dtype=jnp.float32), axis=-1)
    out3 = jax.block_until_ready(
        softmax_cross_entropy_with_logits(labels3, logits3, block_override=(8, 128)))
    check(out3, ref_fn(labels3, logits3))

    # 4) Reduction over a non-last dim (dim=1), tiny class count (heavy lane mask).
    logits4 = jax.random.normal(k[6], (4, 6, 32), dtype=jnp.float32)
    labels4 = jax.nn.softmax(jax.random.normal(k[7], (4, 6, 32), dtype=jnp.float32), axis=1)
    out4 = jax.block_until_ready(softmax_cross_entropy_with_logits(labels4, logits4, dim=1))
    check(out4, ref_fn(labels4, logits4, dim=1))

    print("KERNEL_OK")
</pallas_src>

<mosaic_0001>
module attributes {stable_mosaic.version = 11 : i64} {
  func.func @_xent_kernel_single(%arg0: i32, %arg1: memref<8x128xf32, #tpu.memory_space<vmem>>, %arg2: memref<8x128xf32, #tpu.memory_space<vmem>>, %arg3: memref<8x1xf32, #tpu.memory_space<vmem>>) attributes {dimension_semantics = [#tpu.dimension_semantics<parallel>], iteration_bounds = array<i64: 1>, scalar_prefetch = 0 : i64, scratch_operands = 0 : i64, tpu.core_type = #tpu.core_type<tc>, window_params = [{transform_indices = @transform_0, window_bounds = array<i64: 8, 128>}, {transform_indices = @transform_1, window_bounds = array<i64: 8, 128>}, {transform_indices = @transform_2, window_bounds = array<i64: 8, 1>}]} {
    %c0 = arith.constant 0 : index
    %c0_0 = arith.constant 0 : index
    %0 = vector.load %arg2[%c0, %c0_0] : memref<8x128xf32, #tpu.memory_space<vmem>>, vector<8x128xf32>
    %c0_1 = arith.constant 0 : index
    %c0_2 = arith.constant 0 : index
    %1 = vector.load %arg1[%c0_1, %c0_2] : memref<8x128xf32, #tpu.memory_space<vmem>>, vector<8x128xf32>
    %cst = arith.constant dense<0xFF800000> : vector<8xf32>
    %2 = vector.multi_reduction <maximumf>, %0, %cst [1] : vector<8x128xf32> to vector<8xf32>
    %3 = vector.shape_cast %2 : vector<8xf32> to vector<8x1xf32>
    %4 = vector.broadcast %3 : vector<8x1xf32> to vector<8x128xf32>
    %5 = arith.subf %0, %4 : vector<8x128xf32>
    %6 = math.exp %5 : vector<8x128xf32>
    %cst_3 = arith.constant dense<0.000000e+00> : vector<8xf32>
    %7 = vector.multi_reduction <add>, %6, %cst_3 [1] : vector<8x128xf32> to vector<8xf32>
    %8 = vector.shape_cast %7 : vector<8xf32> to vector<8x1xf32>
    %9 = math.log %8 : vector<8x1xf32>
    %10 = arith.addf %3, %9 : vector<8x1xf32>
    %cst_4 = arith.constant dense<0.000000e+00> : vector<8xf32>
    %11 = vector.multi_reduction <add>, %1, %cst_4 [1] : vector<8x128xf32> to vector<8xf32>
    %12 = vector.shape_cast %11 : vector<8xf32> to vector<8x1xf32>
    %13 = arith.mulf %12, %10 : vector<8x1xf32>
    %14 = arith.mulf %1, %0 : vector<8x128xf32>
    %cst_5 = arith.constant dense<0.000000e+00> : vector<8xf32>
    %15 = vector.multi_reduction <add>, %14, %cst_5 [1] : vector<8x128xf32> to vector<8xf32>
    %16 = vector.shape_cast %15 : vector<8xf32> to vector<8x1xf32>
    %17 = arith.subf %13, %16 : vector<8x1xf32>
    %c0_6 = arith.constant 0 : index
    %c0_7 = arith.constant 0 : index
    %18 = vector.load %arg3[%c0_6, %c0_7] : memref<8x1xf32, #tpu.memory_space<vmem>>, vector<8x1xf32>
    tpu.vector_store %arg3[%c0_6, %c0_7], %17 {strides = array<i32>} : memref<8x1xf32, #tpu.memory_space<vmem>>, vector<8x1xf32>,
    return
  }
  func.func @transform_0(%arg0: i32) -> (i32, i32) {
    %c0_i32 = arith.constant 0 : i32
    %c0_i32_0 = arith.constant 0 : i32
    return %arg0, %c0_i32 : i32, i32
  }
  func.func @transform_1(%arg0: i32) -> (i32, i32) {
    %c0_i32 = arith.constant 0 : i32
    %c0_i32_0 = arith.constant 0 : i32
    return %arg0, %c0_i32 : i32, i32
  }
  func.func @transform_2(%arg0: i32) -> (i32, i32) {
    %c0_i32 = arith.constant 0 : i32
    %c0_i32_0 = arith.constant 0 : i32
    return %arg0, %c0_i32 : i32, i32
  }
}

</mosaic_0001>

<bundles_post_ra>
// kernel: tpu_custom_call.1
= control target key start
LH: loop header
LB: loop body
LE: loop exit
PB: predicated region body
PF: predicated region fallthrough
CT: control target
= control target key end

     0   :  { %7 = vsyncpa [#allocation3], 0  ;;  %s160_s0 = inlined_call_operand.hbm [shape: f32[8,128], index: 0, kind: input, shape index: {}]   ;;  %s161_s1 = inlined_call_operand.hbm [shape: f32[8,128], index: 1, kind: input, shape index: {}]   ;;  %s162_s2 = inlined_call_operand.vmem [shape: f32[8,1], index: 2, kind: output, shape index: {}]  }
   0x1   :  { %8 = vsyncpa [#allocation5], 0  ;;  %s116_s9 = smov [#allocation2]   ;;  %s117_s11 = smov [#allocation4]  }
   0x2   :  { %s15_s10 = sshll.u32 %s116_s9, 4  ;;  %s25_s12 = sshll.u32 %s117_s11, 4  ;;  %s16_s10 = int_to_ptr.vmem [resolvable:$true] %s15_s10  ;;  %s26_s12 = int_to_ptr.vmem [resolvable:$true] %s25_s12 }
   0x3   :  { %s68_s15 = scalar_lea.hbm %s160_s0, 128 }
   0x4   :  { %p69_p0 = scmp.ne.s32.totalorder %s160_s0, %s68_s15  ;;  %p72_p1 = scmp.lt.u32.totalorder %s68_s15, %s160_s0 }
   0x6   :  { %p74_p2 = pnand %p72_p1, %p69_p0 }
   0x8   :  { %77 = shalt.err (!%p74_p2)
}
   0x9   :  { %s78_s20 = scalar_lea.vmem %s16_s10, 128  ;;  %p83_p4 = scmp.lt.s32.totalorder %s16_s10, %s16_s10 }
   0xa   :  { %p79_p3 = scmp.ne.s32.totalorder %s16_s10, %s78_s20  ;;  %p84_p5 = scmp.lt.s32.totalorder %s78_s20, %s78_s20 }
   0xc   :  { %p85_p6 = por %p84_p5, %p83_p4 }
   0xe   :  { %p86_p7 = pnand %p85_p6, %p79_p3 }
  0x10   :  { %89 = shalt.err (!%p86_p7)
}
  0x11   :  { %18 = dma.hbm_to_vmem [thread:$0]  %s160_s0, 128, %s16_s10, [#allocation3]  }
  0x12   :  { %s90_s25 = scalar_lea.hbm %s161_s1, 128 }
  0x13   :  { %p91_p8 = scmp.ne.s32.totalorder %s161_s1, %s90_s25  ;;  %p94_p9 = scmp.lt.u32.totalorder %s90_s25, %s161_s1 }
  0x15   :  { %p96_p10 = pnand %p94_p9, %p91_p8 }
  0x17   :  { %99 = shalt.err (!%p96_p10)
}
  0x18   :  { %s100_s30 = scalar_lea.vmem %s26_s12, 128  ;;  %p105_p12 = scmp.lt.s32.totalorder %s26_s12, %s26_s12 }
  0x19   :  { %p101_p11 = scmp.ne.s32.totalorder %s26_s12, %s100_s30  ;;  %p106_p13 = scmp.lt.s32.totalorder %s100_s30, %s100_s30 }
  0x1b   :  { %p107_p0 = por %p106_p13, %p105_p12 }
  0x1d   :  { %p108_p1 = pnand %p107_p0, %p101_p11 }
  0x1f   :  { %111 = shalt.err (!%p108_p1)
}
  0x20   :  { %28 = dma.hbm_to_vmem [thread:$0]  %s161_s1, 128, %s26_s12, [#allocation5]  }
  0x21   :  { %112 = dma.done.wait [#allocation3], 128  }
  0x22   :  { %113 = vsyncadd [#allocation3], 4294967168 }
  0x23   :  { %114 = dma.done.wait [#allocation5], 128  }
  0x24   :  { %115 = vsyncadd [#allocation5], 4294967168  ;;  %v35_v0 = vld [vmem:[#allocation4] sm:$0xff]  ;;  %v36_v1 = vld [vmem:[#allocation2] sm:$0xff]  ;;  %vm54_vm0 = vcmask 7168  }
  0x25   :  { %37 = vmax.xlane.f32.xlu0 %v35_v0  ;;  %47 = vadd.xlane.f32.xlu1 %v36_v1  ;;  %v50_v2 = vmul.f32 %v36_v1, %v35_v0 }
  0x29   :  { %51 = vadd.xlane.f32.xlu1 %v50_v2 }
  0xb2   :  { %v38_v3 = vpop.xlane.xlu0 %37  ;;  %v48_v8 = vpop.xlane.xlu1 %47 }
  0xb3   :  { %v39_v4 = vsub.f32 %v35_v0, %v38_v3 }
  0xb5   :  { %v40_v5 = vmul.f32 1.442695, %v39_v4 }
  0xb6   :  { %v52_v12 = vpop.xlane.xlu1 %51 }
  0xb7   :  { %64 = vpow2.f32 %v40_v5 }
  0xc1   :  { %v65_v6 = vpop.eup %64 }
  0xc2   :  { %42 = vadd.xlane.f32.xlu0 %v65_v6 }
 0x14f   :  { %v43_v7 = vpop.xlane.xlu0 %42 }
 0x150   :  { %66 = vlog2.f32 %v43_v7 }
 0x15a   :  { %v67_v9 = vpop.eup %66 }
 0x15b   :  { %v45_v10 = vmul.f32 0.6931472, %v67_v9 }
 0x15d   :  { %v46_v11 = vadd.f32 %v45_v10, %v38_v3 }
 0x15f   :  { %v49_v13 = vmul.f32 %v48_v8, %v46_v11 }
 0x161   :  { %v53_v14 = vsub.f32 %v49_v13, %v52_v12 }
 0x163   :  { %55 = vst.msk [vmem:[%s162_s2] sm:$0xff] %vm54_vm0, %v53_v14 }
 0x164   :  { %60 = vsyncpa [#allocation3], 1 }
 0x165   :  { %61 = vsyncpa [#allocation5], 1 }

</bundles_post_ra>
